<compile_context>
chip_gen: v7x
topology: tpu7x:2x2x1
jax: 0.10.0
libtpu: 0.0.40
codegen_flags: <defaults>
</compile_context>

<pallas_src>
import functools

import jax
import jax.numpy as jnp
from jax.experimental import pallas as pl
from jax.experimental.pallas import tpu as pltpu

INPUT_DIM = 370
ENCODING_DIM = 32
HIDDEN_DIM = 48

_MAX_TILE_B = 2048   # bf16-streamed 2048-row tiles fit every generation's
_MIN_TILE_B = 512    # scoped-VMEM default; 512-row floor amortizes ~0.35us/step


def ae_kernel(x_ref, w1_ref, b1_ref, w2_ref, b2_ref,
              w23_ref, b23_ref, w4_ref, b4_ref,
              m_ref, out_ref):
    bf16 = jnp.bfloat16
    x = x_ref[...].astype(bf16)          # bf16 MXU operand (no-op if already bf16)

    # encoder: Linear -> ReLU   (bf16 operands, f32 accumulation)
    h1 = jnp.dot(x, w1_ref[...], preferred_element_type=jnp.float32) + b1_ref[...]
    h1 = jnp.maximum(h1, 0.0)
    h1b = h1.astype(bf16)

    # encoder: Linear -> m
    m = jnp.dot(h1b, w2_ref[...], preferred_element_type=jnp.float32) + b2_ref[...]

    # decoder first Linear folded through the (linear) encoder output (exact):
    #   relu(m @ w3 + b3) == relu(h1 @ (w2 @ w3) + (b2 @ w3 + b3))
    # h2 no longer depends on m -> shorter per-tile MXU critical path.
    h2 = jnp.dot(h1b, w23_ref[...], preferred_element_type=jnp.float32) + b23_ref[...]
    h2 = jnp.maximum(h2, 0.0)

    # decoder: final Linear
    out = jnp.dot(h2.astype(bf16), w4_ref[...],
                  preferred_element_type=jnp.float32) + b4_ref[...]

    m_ref[...] = m.astype(m_ref.dtype)
    out_ref[...] = out.astype(out_ref.dtype)


def _round_up(n, m):
    return ((n + m - 1) // m) * m


def _choose_tile_b(B, tile_b):
    """Batch-tile selection: multiple of 8 rows, >=4 grid steps for large B."""
    if tile_b is None:
        tb = max(_MIN_TILE_B, _round_up(pl.cdiv(B, 4), 8))
        tb = min(tb, _MAX_TILE_B)
    else:
        tb = tile_b
    tb = min(tb, B)
    if B >= 8:
        tb = max(8, (tb // 8) * 8)   # sublane alignment for the (8,128) rule
    return tb


@functools.partial(jax.jit, static_argnames=("tile_b", "io_dtype"))
def ae_forward(x, params, *, tile_b=None, io_dtype=jnp.bfloat16):
    """x: [B, INPUT_DIM] float32.

    Returns (m [B, ENCODING_DIM] f32, out [B, INPUT_DIM] io_dtype).
    """
    B = x.shape[0]
    w1, b1, w2, b2, w3, b3, w4, b4 = params

    # Fold decoder's first Linear into the encoder output path. Full precision
    # for the 48x32x48 fold (negligible cost, avoids compounding bf16 rounding
    # through two chained weight products).
    hp = jax.lax.Precision.HIGHEST
    w23 = jnp.dot(w2, w3, precision=hp)               # [48, 48]
    b23 = jnp.dot(b2, w3, precision=hp) + b3          # [1, 48]

    # Streamed input in bf16 (halves the dominant HBM traffic); bf16 weights
    # (VMEM-resident, cast once here) so the MXU sees explicit bf16 operands.
    bf16 = jnp.bfloat16
    x_in = x.astype(io_dtype)
    w1b, w2b, w23b, w4b = (w.astype(bf16) for w in (w1, w2, w23, w4))

    tb = _choose_tile_b(B, tile_b)
    grid = (pl.cdiv(B, tb),)

    def batch_spec(n):
        # Tiled along the batch; last dim equals the full array dim.
        return pl.BlockSpec((tb, n), lambda i: (i, 0))

    def resident_spec(arr):
        # Full-array block, constant index_map -> stays VMEM-resident across
        # grid steps (weights/biases are never re-DMA'd).
        return pl.BlockSpec(arr.shape, lambda i: (0, 0))

    io_bytes = jnp.dtype(io_dtype).itemsize
    weight_bytes = 2 * (INPUT_DIM * HIDDEN_DIM + HIDDEN_DIM * ENCODING_DIM
                        + HIDDEN_DIM * HIDDEN_DIM + HIDDEN_DIM * INPUT_DIM)
    cost = pl.CostEstimate(
        flops=2 * B * (INPUT_DIM * HIDDEN_DIM + HIDDEN_DIM * ENCODING_DIM
                       + HIDDEN_DIM * HIDDEN_DIM + HIDDEN_DIM * INPUT_DIM),
        transcendentals=0,
        bytes_accessed=B * INPUT_DIM * io_bytes          # x in
        + B * ENCODING_DIM * 4                           # m out (f32)
        + B * INPUT_DIM * io_bytes                       # out
        + weight_bytes,
    )

    return pl.pallas_call(
        ae_kernel,
        out_shape=(
            jax.ShapeDtypeStruct((B, ENCODING_DIM), jnp.float32),
            jax.ShapeDtypeStruct((B, INPUT_DIM), io_dtype),
        ),
        grid=grid,
        in_specs=[
            batch_spec(INPUT_DIM),
            resident_spec(w1b), resident_spec(b1),
            resident_spec(w2b), resident_spec(b2),
            resident_spec(w23b), resident_spec(b23),
            resident_spec(w4b), resident_spec(b4),
        ],
        out_specs=(batch_spec(ENCODING_DIM), batch_spec(INPUT_DIM)),
        compiler_params=pltpu.CompilerParams(
            dimension_semantics=("parallel",),   # megacore sharding on v7x
        ),
        cost_estimate=cost,
    )(x_in, w1b, b1, w2b, b2, w23b, b23, w4b, b4)


def init_params(key):
    """Deterministic synthetic parameter init (shapes match nn.Linear layers)."""
    ks = jax.random.split(key, 8)

    def lin(kw, kb, fan_in, fan_out):
        bound = 1.0 / jnp.sqrt(float(fan_in))
        w = jax.random.uniform(kw, (fan_in, fan_out), jnp.float32, -bound, bound)
        b = jax.random.uniform(kb, (1, fan_out), jnp.float32, -bound, bound)
        return w, b

    w1, b1 = lin(ks[0], ks[1], INPUT_DIM, HIDDEN_DIM)
    w2, b2 = lin(ks[2], ks[3], HIDDEN_DIM, ENCODING_DIM)
    w3, b3 = lin(ks[4], ks[5], ENCODING_DIM, HIDDEN_DIM)
    w4, b4 = lin(ks[6], ks[7], HIDDEN_DIM, INPUT_DIM)
    return (w1, b1, w2, b2, w3, b3, w4, b4)


def ae_reference(x, params):
    """Unfused f32 reference matching the PyTorch module exactly."""
    w1, b1, w2, b2, w3, b3, w4, b4 = params
    h1 = jnp.maximum(x @ w1 + b1, 0.0)
    m = h1 @ w2 + b2
    h2 = jnp.maximum(m @ w3 + b3, 0.0)
    out = h2 @ w4 + b4
    return m, out


if __name__ == "__main__":
    key = jax.random.PRNGKey(0)
    k_x, k_p = jax.random.split(key)

    B = 256  # small batch; tile_b=64 exercises a 4-step pipelined batch grid
    x = jax.random.normal(k_x, (B, INPUT_DIM), dtype=jnp.float32)
    params = init_params(k_p)

    m, out = ae_forward(x, params, tile_b=64)
    jax.block_until_ready((m, out))

    m_ref, out_ref = ae_reference(x, params)
    assert m.shape == (B, ENCODING_DIM) and out.shape == (B, INPUT_DIM)
    # bf16-streamed x / bf16 MXU operands with f32 accumulation: expected
    # error ~1e-3; 2e-2 tolerance still catches real bugs (wrong weights,
    # missing bias/ReLU, tile indexing errors all blow far past this).
    assert jnp.allclose(m.astype(jnp.float32), m_ref, atol=2e-2, rtol=2e-2)
    assert jnp.allclose(out.astype(jnp.float32), out_ref, atol=2e-2, rtol=2e-2)

    print("KERNEL_OK")
</pallas_src>

<mosaic_0001>
module attributes {stable_mosaic.version = 11 : i64} {
  func.func @ae_kernel(%arg0: i32, %arg1: memref<64x370xbf16, #tpu.memory_space<vmem>>, %arg2: memref<370x48xbf16, #tpu.memory_space<vmem>>, %arg3: memref<1x48xf32, #tpu.memory_space<vmem>>, %arg4: memref<48x32xbf16, #tpu.memory_space<vmem>>, %arg5: memref<1x32xf32, #tpu.memory_space<vmem>>, %arg6: memref<48x48xbf16, #tpu.memory_space<vmem>>, %arg7: memref<1x48xf32, #tpu.memory_space<vmem>>, %arg8: memref<48x370xbf16, #tpu.memory_space<vmem>>, %arg9: memref<1x370xf32, #tpu.memory_space<vmem>>, %arg10: memref<64x32xf32, #tpu.memory_space<vmem>>, %arg11: memref<64x370xbf16, #tpu.memory_space<vmem>>) attributes {dimension_semantics = [#tpu.dimension_semantics<parallel>], iteration_bounds = array<i64: 4>, scalar_prefetch = 0 : i64, scratch_operands = 0 : i64, tpu.core_type = #tpu.core_type<tc>, window_params = [{transform_indices = @transform_0, window_bounds = array<i64: 64, 370>}, {pipeline_mode = #tpu.pipeline_mode<synchronous>, transform_indices = @transform_1, window_bounds = array<i64: 370, 48>}, {pipeline_mode = #tpu.pipeline_mode<synchronous>, transform_indices = @transform_2, window_bounds = array<i64: 1, 48>}, {pipeline_mode = #tpu.pipeline_mode<synchronous>, transform_indices = @transform_3, window_bounds = array<i64: 48, 32>}, {pipeline_mode = #tpu.pipeline_mode<synchronous>, transform_indices = @transform_4, window_bounds = array<i64: 1, 32>}, {pipeline_mode = #tpu.pipeline_mode<synchronous>, transform_indices = @transform_5, window_bounds = array<i64: 48, 48>}, {pipeline_mode = #tpu.pipeline_mode<synchronous>, transform_indices = @transform_6, window_bounds = array<i64: 1, 48>}, {pipeline_mode = #tpu.pipeline_mode<synchronous>, transform_indices = @transform_7, window_bounds = array<i64: 48, 370>}, {pipeline_mode = #tpu.pipeline_mode<synchronous>, transform_indices = @transform_8, window_bounds = array<i64: 1, 370>}, {transform_indices = @transform_9, window_bounds = array<i64: 64, 32>}, {transform_indices = @transform_10, window_bounds = array<i64: 64, 370>}]} {
    %c0 = arith.constant 0 : index
    %c0_0 = arith.constant 0 : index
    %0 = vector.load %arg1[%c0, %c0_0] : memref<64x370xbf16, #tpu.memory_space<vmem>>, vector<64x370xbf16>
    %c0_1 = arith.constant 0 : index
    %c0_2 = arith.constant 0 : index
    %1 = vector.load %arg2[%c0_1, %c0_2] : memref<370x48xbf16, #tpu.memory_space<vmem>>, vector<370x48xbf16>
    %cst = arith.constant dense<0.000000e+00> : vector<64x48xf32>
    %2 = tpu.matmul %0, %1, %cst {dimension_numbers = #tpu.dot_dimension_numbers<[1], [0], [0], [1], [0, 0, 1, 1], [], []>} : vector<64x370xbf16>, vector<370x48xbf16>, vector<64x48xf32> -> vector<64x48xf32>
    %c0_3 = arith.constant 0 : index
    %c0_4 = arith.constant 0 : index
    %3 = vector.load %arg3[%c0_3, %c0_4] : memref<1x48xf32, #tpu.memory_space<vmem>>, vector<1x48xf32>
    %4 = vector.broadcast %3 : vector<1x48xf32> to vector<64x48xf32>
    %5 = arith.addf %2, %4 : vector<64x48xf32>
    %cst_5 = arith.constant 0.000000e+00 : f32
    %6 = vector.broadcast %cst_5 : f32 to vector<64x48xf32>
    %7 = arith.maximumf %5, %6 : vector<64x48xf32>
    %8 = arith.truncf %7 : vector<64x48xf32> to vector<64x48xbf16>
    %c0_6 = arith.constant 0 : index
    %c0_7 = arith.constant 0 : index
    %9 = vector.load %arg4[%c0_6, %c0_7] : memref<48x32xbf16, #tpu.memory_space<vmem>>, vector<48x32xbf16>
    %cst_8 = arith.constant dense<0.000000e+00> : vector<64x32xf32>
    %10 = tpu.matmul %8, %9, %cst_8 {dimension_numbers = #tpu.dot_dimension_numbers<[1], [0], [0], [1], [0, 0, 1, 1], [], []>} : vector<64x48xbf16>, vector<48x32xbf16>, vector<64x32xf32> -> vector<64x32xf32>
    %c0_9 = arith.constant 0 : index
    %c0_10 = arith.constant 0 : index
    %11 = vector.load %arg5[%c0_9, %c0_10] : memref<1x32xf32, #tpu.memory_space<vmem>>, vector<1x32xf32>
    %12 = vector.broadcast %11 : vector<1x32xf32> to vector<64x32xf32>
    %13 = arith.addf %10, %12 : vector<64x32xf32>
    %c0_11 = arith.constant 0 : index
    %c0_12 = arith.constant 0 : index
    %14 = vector.load %arg6[%c0_11, %c0_12] : memref<48x48xbf16, #tpu.memory_space<vmem>>, vector<48x48xbf16>
    %cst_13 = arith.constant dense<0.000000e+00> : vector<64x48xf32>
    %15 = tpu.matmul %8, %14, %cst_13 {dimension_numbers = #tpu.dot_dimension_numbers<[1], [0], [0], [1], [0, 0, 1, 1], [], []>} : vector<64x48xbf16>, vector<48x48xbf16>, vector<64x48xf32> -> vector<64x48xf32>
    %c0_14 = arith.constant 0 : index
    %c0_15 = arith.constant 0 : index
    %16 = vector.load %arg7[%c0_14, %c0_15] : memref<1x48xf32, #tpu.memory_space<vmem>>, vector<1x48xf32>
    %17 = vector.broadcast %16 : vector<1x48xf32> to vector<64x48xf32>
    %18 = arith.addf %15, %17 : vector<64x48xf32>
    %cst_16 = arith.constant 0.000000e+00 : f32
    %19 = vector.broadcast %cst_16 : f32 to vector<64x48xf32>
    %20 = arith.maximumf %18, %19 : vector<64x48xf32>
    %21 = arith.truncf %20 : vector<64x48xf32> to vector<64x48xbf16>
    %c0_17 = arith.constant 0 : index
    %c0_18 = arith.constant 0 : index
    %22 = vector.load %arg8[%c0_17, %c0_18] : memref<48x370xbf16, #tpu.memory_space<vmem>>, vector<48x370xbf16>
    %cst_19 = arith.constant dense<0.000000e+00> : vector<64x370xf32>
    %23 = tpu.matmul %21, %22, %cst_19 {dimension_numbers = #tpu.dot_dimension_numbers<[1], [0], [0], [1], [0, 0, 1, 1], [], []>} : vector<64x48xbf16>, vector<48x370xbf16>, vector<64x370xf32> -> vector<64x370xf32>
    %c0_20 = arith.constant 0 : index
    %c0_21 = arith.constant 0 : index
    %24 = vector.load %arg9[%c0_20, %c0_21] : memref<1x370xf32, #tpu.memory_space<vmem>>, vector<1x370xf32>
    %25 = vector.broadcast %24 : vector<1x370xf32> to vector<64x370xf32>
    %26 = arith.addf %23, %25 : vector<64x370xf32>
    %c0_22 = arith.constant 0 : index
    %c0_23 = arith.constant 0 : index
    %27 = vector.load %arg10[%c0_22, %c0_23] : memref<64x32xf32, #tpu.memory_space<vmem>>, vector<64x32xf32>
    tpu.vector_store %arg10[%c0_22, %c0_23], %13 {strides = array<i32>} : memref<64x32xf32, #tpu.memory_space<vmem>>, vector<64x32xf32>,
    %28 = arith.truncf %26 : vector<64x370xf32> to vector<64x370xbf16>
    %c0_24 = arith.constant 0 : index
    %c0_25 = arith.constant 0 : index
    %29 = vector.load %arg11[%c0_24, %c0_25] : memref<64x370xbf16, #tpu.memory_space<vmem>>, vector<64x370xbf16>
    tpu.vector_store %arg11[%c0_24, %c0_25], %28 {strides = array<i32>} : memref<64x370xbf16, #tpu.memory_space<vmem>>, vector<64x370xbf16>,
    return
  }
  func.func @transform_0(%arg0: i32) -> (i32, i32) {
    %c0_i32 = arith.constant 0 : i32
    %c0_i32_0 = arith.constant 0 : i32
    return %arg0, %c0_i32 : i32, i32
  }
  func.func @transform_1(%arg0: i32) -> (i32, i32) {
    %c0_i32 = arith.constant 0 : i32
    %c0_i32_0 = arith.constant 0 : i32
    %c0_i32_1 = arith.constant 0 : i32
    return %c0_i32, %c0_i32_0 : i32, i32
  }
  func.func @transform_2(%arg0: i32) -> (i32, i32) {
    %c0_i32 = arith.constant 0 : i32
    %c0_i32_0 = arith.constant 0 : i32
    %c0_i32_1 = arith.constant 0 : i32
    return %c0_i32, %c0_i32_0 : i32, i32
  }
  func.func @transform_3(%arg0: i32) -> (i32, i32) {
    %c0_i32 = arith.constant 0 : i32
    %c0_i32_0 = arith.constant 0 : i32
    %c0_i32_1 = arith.constant 0 : i32
    return %c0_i32, %c0_i32_0 : i32, i32
  }
  func.func @transform_4(%arg0: i32) -> (i32, i32) {
    %c0_i32 = arith.constant 0 : i32
    %c0_i32_0 = arith.constant 0 : i32
    %c0_i32_1 = arith.constant 0 : i32
    return %c0_i32, %c0_i32_0 : i32, i32
  }
  func.func @transform_5(%arg0: i32) -> (i32, i32) {
    %c0_i32 = arith.constant 0 : i32
    %c0_i32_0 = arith.constant 0 : i32
    %c0_i32_1 = arith.constant 0 : i32
    return %c0_i32, %c0_i32_0 : i32, i32
  }
  func.func @transform_6(%arg0: i32) -> (i32, i32) {
    %c0_i32 = arith.constant 0 : i32
    %c0_i32_0 = arith.constant 0 : i32
    %c0_i32_1 = arith.constant 0 : i32
    return %c0_i32, %c0_i32_0 : i32, i32
  }
  func.func @transform_7(%arg0: i32) -> (i32, i32) {
    %c0_i32 = arith.constant 0 : i32
    %c0_i32_0 = arith.constant 0 : i32
    %c0_i32_1 = arith.constant 0 : i32
    return %c0_i32, %c0_i32_0 : i32, i32
  }
  func.func @transform_8(%arg0: i32) -> (i32, i32) {
    %c0_i32 = arith.constant 0 : i32
    %c0_i32_0 = arith.constant 0 : i32
    %c0_i32_1 = arith.constant 0 : i32
    return %c0_i32, %c0_i32_0 : i32, i32
  }
  func.func @transform_9(%arg0: i32) -> (i32, i32) {
    %c0_i32 = arith.constant 0 : i32
    %c0_i32_0 = arith.constant 0 : i32
    return %arg0, %c0_i32 : i32, i32
  }
  func.func @transform_10(%arg0: i32) -> (i32, i32) {
    %c0_i32 = arith.constant 0 : i32
    %c0_i32_0 = arith.constant 0 : i32
    return %arg0, %c0_i32 : i32, i32
  }
}

</mosaic_0001>

<bundles_post_ra>
// kernel: ae_forward.1
= control target key start
LH: loop header
LB: loop body
LE: loop exit
PB: predicated region body
PF: predicated region fallthrough
CT: control target
= control target key end

     0   :  { %s1846_s13 = smov 0   ;;  %s2115_s0 = inlined_call_operand.vmem [shape: bf16[256,370], index: 0, kind: input, shape index: {}]   ;;  %s2116_s1 = inlined_call_operand.vmem [shape: bf16[370,48], index: 1, kind: input, shape index: {}]   ;;  %s2117_s2 = inlined_call_operand.vmem [shape: f32[1,48], index: 2, kind: input, shape index: {}]   ;;  %s2118_s3 = inlined_call_operand.vmem [shape: bf16[48,32], index: 3, kind: input, shape index: {}]   ;;  %s2119_s4 = inlined_call_operand.vmem [shape: f32[1,32], index: 4, kind: input, shape index: {}]   ;;  %s2120_s5 = inlined_call_operand.vmem [shape: bf16[48,48], index: 5, kind: input, shape index: {}]   ;;  %s2121_s6 = inlined_call_operand.vmem [shape: f32[1,48], index: 6, kind: input, shape index: {}]   ;;  %s2122_s7 = inlined_call_operand.vmem [shape: bf16[48,370], index: 7, kind: input, shape index: {}]   ;;  %s2123_s8 = inlined_call_operand.vmem [shape: f32[1,370], index: 8, kind: input, shape index: {}]   ;;  %s2124_s9 = inlined_call_operand.vmem [shape: f32[256,32], index: 9, kind: output, shape index: {0}]   ;;  %s2125_s10 = inlined_call_operand.vmem [shape: bf16[256,370], index: 10, kind: output, shape index: {1}]  }
   0x1 LB: > { %s1455_s14 = sadd.s32 4294967295, %s1788_s13   ;;  %p1459_p0 = scmp.ge.s32.totalorder %s1788_s13, 1  ;;  %s1788_s13 = sphi %s1846_s13, %s21_s13  }
   0x2   : > { %p317_p1 = scmp.lt.s32.totalorder %s1788_s13, 5 }
   0x4   : > { %p318_p2 = pnand %p1459_p0, %p317_p1 }
   0x5   : > { %v1724_v0 = vld [vmem:[%s2116_s1 + $0x40] sm:$0xff] (!%p318_p2)   ;;  %v1726_v2 = vld [vmem:[%s2116_s1 + $0x48] sm:$0xff] (!%p318_p2)   ;;  %v1729_v5 = vld [vmem:[%s2116_s1 + $0x50] sm:$0xff] (!%p318_p2)   ;;  %s1460_s29 = sshll.u32 (!%p318_p2), %s1455_s14, 3  ;;  %vm654_vm0 = vcmask (!%p318_p2), 932864   ;;  %vm667_vm1 = vcmask (!%p318_p2), 1040384  }
   0x6   : > { %321 = sbr.rel (%p318_p2) target bundleno = 736 (0x2e0), region = 56  ;;  %v1725_v1 = vld [vmem:[%s2116_s1] sm:$0xff] (!%p318_p2)   ;;  %1574 = vmatprep.subr.bf16.mxu0 (!%p318_p2), %v1724_v0  ;;  %v1728_v4 = vld [vmem:[%s2116_s1 + $0x8] sm:$0xff] (!%p318_p2)   ;;  %v1731_v7 = vld [vmem:[%s2116_s1 + $0x10] sm:$0xff] (!%p318_p2)   ;;  %p363_p3 = scmp.lt.s32.totalorder (!%p318_p2), %s1460_s29, 31  ;;  %vm844_vm2 = vcmask (!%p318_p2), 392192  }
   0x7   : > { %1575 = vmatpush3.bf16.msra.mxu0 (!%p318_p2), %v1725_v1  ;;  %v1727_v3 = vld [vmem:[%s2116_s1 + $0x80] sm:$0xff] (!%p318_p2)   ;;  %v1730_v6 = vld [vmem:[%s2116_s1 + $0x88] sm:$0xff] (!%p318_p2)   ;;  %v1732_v8 = vld [vmem:[%s2116_s1 + $0x58] sm:$0xff] (!%p318_p2)   ;;  %vm1257_vm3 = vcmask (!%p318_p2), 261120   ;;  %vm1347_vm4 = vcmask (!%p318_p2), 928768  }
   0x8   : > { %1576 = vmatprep.subr.bf16.mxu0 (!%p318_p2), %v1726_v2  ;;  %1647 = vmatprep.subr.bf16.mxu1 (!%p318_p2), %v1727_v3  ;;  %v1733_v9 = vld [vmem:[%s2116_s1 + $0x90] sm:$0xff] (!%p318_p2)   ;;  %v1734_v10 = vld [vmem:[%s2116_s1 + $0x18] sm:$0xff] (!%p318_p2)   ;;  %v1735_v11 = vld [vmem:[%s2116_s1 + $0x60] sm:$0xff] (!%p318_p2)  }
   0x9   : > { %1648 = vmatpush3.bf16.msra.mxu1 (!%p318_p2), %v1727_v3  ;;  %v1736_v12 = vld [vmem:[%s2116_s1 + $0x98] sm:$0xff] (!%p318_p2)   ;;  %v1737_v13 = vld [vmem:[%s2116_s1 + $0x20] sm:$0xff] (!%p318_p2)   ;;  %v1738_v15 = vld [vmem:[%s2116_s1 + $0x68] sm:$0xff] (!%p318_p2)  }
   0xa   : > { %1649 = vmatprep.subr.bf16.mxu1 (!%p318_p2), %v1730_v6  ;;  %v1739_v14 = vld [vmem:[%s2116_s1 + $0xa0] sm:$0xff] (!%p318_p2)   ;;  %v1740_v16 = vld [vmem:[%s2116_s1 + $0x28] sm:$0xff] (!%p318_p2)   ;;  %v1741_v18 = vld [vmem:[%s2116_s1 + $0x70] sm:$0xff] (!%p318_p2)  }
   0xb   : > { %1577 = vmatpush3.bf16.msra.mxu0 (!%p318_p2), %v1728_v4  ;;  %v1742_v17 = vld [vmem:[%s2116_s1 + $0xa8] sm:$0xff] (!%p318_p2)   ;;  %v1743_v19 = vld [vmem:[%s2116_s1 + $0x30] sm:$0xff] (!%p318_p2)   ;;  %v1744_v20 = vld [vmem:[%s2116_s1 + $0x78] sm:$0xff] (!%p318_p2)  }
   0xc   : > { %1578 = vmatprep.subr.bf16.mxu0 (!%p318_p2), %v1729_v5  ;;  %v1745_v21 = vld [vmem:[%s2116_s1 + $0xb0] sm:$0xff] (!%p318_p2)   ;;  %v1746_v24 = vld [vmem:[%s2116_s1 + $0x38] sm:$0xff] (!%p318_p2)   ;;  %v1764_v31 = vld [vmem:[%s2120_s5] sm:$0xff] (!%p318_p2)  }
   0xd   : > { %1650 = vmatpush3.bf16.msra.mxu1 %v1730_v6  ;;  %s2127_s29 = smov (!%p363_p3, %s1460_s29), 31  ;;  %v1750_v25 = vld [vmem:[%s2116_s1 + $0xb8] ss:$0 sps:$4 sm:$0x11]   ;;  %v1765_v38 = vld [vmem:[%s2120_s5 + $0x8] sm:$0xff]   ;;  %v1766_v39 = vld [vmem:[%s2118_s3] sm:$0xff]  }
   0xe   : > { %1651 = vmatprep.subr.bf16.mxu1 %v1733_v9  ;;  %s1714_s30 = smul.u32 12, %s2127_s29  ;;  %v669_v27 = vsel %vm667_vm1, %v1750_v25, 0  ;;  %v1768_v40 = vld [vmem:[%s2118_s3 + $0x8] sm:$0xff]   ;;  %v1767_v41 = vld [vmem:[%s2120_s5 + $0x10] sm:$0xff]   ;;  %v1979_v47 = vld [vmem:[%s2117_s2] ss:$0 sm:$0xff] }
   0xf   : > { %1579 = vmatpush3.bf16.msra.mxu0 %v1731_v7  ;;  %v1769_v42 = vld [vmem:[%s2118_s3 + $0x10] sm:$0xff]   ;;  %s1463_s11 = sshll.u32 %s2127_s29, 3 }
  0x10   : > { %1580 = vmatprep.subr.bf16.mxu0 %v1732_v8  ;;  %s1922_s22 = scalar_lea.vmem %s2115_s0, %s1714_s30  ;;  %v1772_v43 = vld [vmem:[%s2122_s7 + $0x4] ss:$12 sps:$4 sm:$0xff]   ;;  %v1776_v44 = vld [vmem:[%s2122_s7 + $0x8] ss:$12 sps:$4 sm:$0xff]   ;;  %s2029_s14 = scalar_lea.vmem %s2124_s9, %s1463_s11 }
  0x11   : > { %1652 = vmatpush3.bf16.msra.mxu1 %v1733_v9  ;;  %v1749_v22 = vld [vmem:[%s1922_s22 + $0x4] ss:$12 sps:$4 sm:$0xff]   ;;  %v1751_v23 = vld [vmem:[%s1922_s22 + $0x8] ss:$12 sps:$4 sm:$0xff]   ;;  %v1747_v26 = vld [vmem:[%s1922_s22] ss:$12 sps:$4 sm:$0xff]   ;;  %s2072_s24 = scalar_lea.vmem %s2125_s10, %s1714_s30 }
  0x12   : > { %1653 = vmatprep.subr.bf16.mxu1 %v1736_v12  ;;  %703 = vmatprep.mubr.bf16.mxu0 %v1749_v22  ;;  %v1753_v28 = vld [vmem:[%s1922_s22 + $0x1c] ss:$12 sps:$4 sm:$0xff]   ;;  %v1752_v29 = vld [vmem:[%s1922_s22 + $0x20] ss:$12 sps:$4 sm:$0xff]   ;;  %v1759_v30 = vld [vmem:[%s1922_s22 + $0x38] ss:$12 sps:$4 sm:$0xff]  }
  0x13   : > { %1581 = vmatpush3.bf16.msra.mxu0 %v1734_v10  ;;  %1663 = vmatprep.mubr.msk.bf16.mxu1 %vm654_vm0, %v1751_v23  ;;  %v1755_v32 = vld [vmem:[%s1922_s22 + $0x18] ss:$12 sps:$4 sm:$0xff]   ;;  %v1756_v33 = vld [vmem:[%s1922_s22 + $0x34] ss:$12 sps:$4 sm:$0xff]   ;;  %v1760_v34 = vld [vmem:[%s1922_s22 + $0x50] ss:$12 sps:$4 sm:$0xff]  }
  0x14   : > { %1582 = vmatprep.subr.bf16.mxu0 %v1735_v11  ;;  %v1758_v35 = vld [vmem:[%s1922_s22 + $0x30] ss:$12 sps:$4 sm:$0xff]   ;;  %v1761_v36 = vld [vmem:[%s1922_s22 + $0x4c] ss:$12 sps:$4 sm:$0xff]   ;;  %v1763_v37 = vld [vmem:[%s1922_s22 + $0x48] ss:$12 sps:$4 sm:$0xff]  }
  0x15   : > { %1654 = vmatpush3.bf16.msra.mxu1 %v1736_v12 }
  0x16   : > { %1655 = vmatprep.subr.bf16.mxu1 %v1739_v14 }
  0x17   : > { %1583 = vmatpush3.bf16.msra.mxu0 %v1737_v13 }
  0x18   : > { %1584 = vmatprep.subr.bf16.mxu0 %v1738_v15 }
  0x19   : > { %1656 = vmatpush3.bf16.msra.mxu1 %v1739_v14 }
  0x1a   : > { %1657 = vmatprep.subr.bf16.mxu1 %v1742_v17 }
  0x1b   : > { %1585 = vmatpush3.bf16.msra.mxu0 %v1740_v16 }
  0x1c   : > { %1586 = vmatprep.subr.bf16.mxu0 %v1741_v18 }
  0x1d   : > { %1658 = vmatpush3.bf16.msra.mxu1 %v1742_v17 }
  0x1e   : > { %1659 = vmatprep.subr.bf16.mxu1 %v1745_v21 }
  0x1f   : > { %1587 = vmatpush3.bf16.msra.mxu0 %v1743_v19 }
  0x20   : > { %1588 = vmatprep.subr.bf16.mxu0 %v1744_v20  ;;  %v1770_v20 = vld [vmem:[%s2122_s7] ss:$12 sps:$4 sm:$0xff]  }
  0x21   : > { %1660 = vmatpush3.bf16.msra.mxu1 %v1745_v21 }
  0x22   : > { %1713 = vmatprep.subr.msk.bf16.mxu1 %vm667_vm1, %v1750_v25 }
  0x23   : > { %1589 = vmatpush3.bf16.msra.mxu0 %v1746_v24  ;;  %v1775_v24 = vld [vmem:[%s2122_s7 + $0x1c] ss:$12 sps:$4 sm:$0xff]  }
  0x24   : > { %1685 = vmatprep.subr.bf16.mxu0 %v1764_v31 }
  0x25   : > { %1662 = vmatpush3.bf16.msra.mxu1 %v669_v27  ;;  %v1773_v27 = vld [vmem:[%s2122_s7 + $0x18] ss:$12 sps:$4 sm:$0xff]  }
  0x26   : > { %704 = vmatmul.mubr.bf16.vlgmr.msra.gmra.mrb[0].mxu0 %v1747_v26  ;;  %1671 = vmatprep.subr.bf16.mxu1 %v1766_v39 }
  0x27   : > { %711 = vmatprep.mubr.bf16.mxu0 %v1753_v28  ;;  %1686 = vmatpush3.bf16.msra.mxu0 %v1764_v31 }
  0x28   : > { %1664 = vmatmul.mubr.msk.bf16.vlgmr.msra.gmra.mrb[0].mxu1 %vm654_vm0, %v1752_v29  ;;  %1687 = vmatprep.subr.bf16.mxu0 %v1765_v38 }
  0x29   : > { %1667 = vmatprep.mubr.msk.bf16.mxu1 %vm654_vm0, %v1759_v30  ;;  %1672 = vmatpush3.bf16.msra.mxu1 %v1766_v39 }
  0x2a   : > { %1673 = vmatprep.subr.bf16.mxu1 %v1768_v40 }
  0x2b   : > { %1688 = vmatpush3.bf16.msra.mxu0 %v1765_v38 }
  0x2c   : > { %1689 = vmatprep.subr.bf16.mxu0 %v1767_v41 }
  0x2d   : > { %1674 = vmatpush3.bf16.msra.mxu1 %v1768_v40 }
  0x2e   : > { %712 = vmatmul.mubr.bf16.gmra.mrb[4].mxu0 %v1755_v32  ;;  %1675 = vmatprep.subr.bf16.mxu1 %v1769_v42 }
  0x2f   : > { %719 = vmatprep.mubr.bf16.mxu0 %v1756_v33  ;;  %1690 = vmatpush3.bf16.msra.mxu0 %v1767_v41 }
  0x30   : > { %1668 = vmatmul.mubr.msk.bf16.gmra.mrb[4].mxu1 %vm654_vm0, %v1760_v34  ;;  %1699 = vmatprep.subr.bf16.mxu0 %v1776_v44 }
  0x31   : > { %1676 = vmatpush3.bf16.msra.mxu1 %v1769_v42 }
  0x32   : > { %1119 = vmatprep.subr.bf16.mxu1 %v1772_v43 }
  0x36   : > { %720 = vmatmul.mubr.bf16.gmra.mrb[8].mxu0 %v1758_v35 }
  0x37   : > { %727 = vmatprep.mubr.bf16.mxu0 %v1761_v36 }
  0x3e   : > { %728 = vmatmul.mubr.bf16.gmra.mrb[12].mxu0 %v1763_v37 }
  0xf9   : > { %v1590_v45 = vpop.f32.mrb[0].mxu0 }
  0xfa   : > { %v1591_v46 = vpop.f32.mrb[1].mxu0 }
  0xfb   : > { %v1592_v48 = vadd.f32 %v1591_v46, %v1590_v45  ;;  %v1593_v49 = vpop.f32.mrb[2].mxu0  ;;  %v1665_v51 = vpop.f32.mrb[0].mxu1  ;;  %v1777_v45 = vld [vmem:[%s2122_s7 + $0x20] ss:$12 sps:$4 sm:$0xff]  }
  0xfc   : > { %v1594_v50 = vpop.f32.mrb[3].mxu0  ;;  %v770_v54 = vpop.f32.mrb[1].mxu1  ;;  %v1780_v46 = vld [vmem:[%s2122_s7 + $0x34] ss:$12 sps:$4 sm:$0xff]  }
  0xfd   : > { %v1595_v52 = vadd.f32 %v1594_v50, %v1593_v49  ;;  %v706_v53 = vadd.f32 %v1592_v48, %v1979_v47  ;;  %v1666_v55 = vpop.f32.mrb[2].mxu1  ;;  %v1781_v48 = vld [vmem:[%s2122_s7 + $0x38] ss:$12 sps:$4 sm:$0xff]   ;;  %v1790_v49 = vmov 0   ;;  %v1507_v50 = vld [vmem:[%s2119_s4] ss:$0 sm:$0xff] }
  0xfe   : > { %v773_v58 = vpop.f32.mrb[3].mxu1 }
  0xff   : > { %v771_v56 = vadd.f32 %v770_v54, %v706_v53  ;;  %v709_v57 = vadd.f32 %v1595_v52, %v1979_v47 }
 0x101   : > { %v774_v59 = vadd.f32 %v773_v58, %v709_v57  ;;  %v1596_v60 = vpop.f32.mrb[4].mxu0  ;;  %v801_v62 = vmax.f32 %v771_v56, 0.0 }
 0x102   : > { %v1597_v61 = vpop.f32.mrb[5].mxu0 }
 0x103   : > { %v802_v63 = vmax.f32 %v774_v59, 0.0  ;;  %v1598_v0 = vadd.f32 %v1597_v61, %v1596_v60  ;;  %v1599_v1 = vpop.f32.mrb[6].mxu0  ;;  %v1669_v3 = vpop.f32.mrb[4].mxu1 }
 0x104   : > { %v1600_v2 = vpop.f32.mrb[7].mxu0  ;;  %v786_v7 = vpop.f32.mrb[5].mxu1 }
 0x105   : > { %v809_v4 = vpack.c.bf16 %v802_v63, %v801_v62  ;;  %v714_v5 = vadd.f32 %v1598_v0, %v1979_v47  ;;  %v1601_v6 = vadd.f32 %v1600_v2, %v1599_v1  ;;  %v1670_v8 = vpop.f32.mrb[6].mxu1 }
 0x106   : > { %v789_v11 = vpop.f32.mrb[7].mxu1 }
 0x107   : > { %v779_v9 = vadd.f32 %v1665_v51, %v714_v5  ;;  %v717_v10 = vadd.f32 %v1601_v6, %v1979_v47  ;;  %1677 = vmatprep.mubr.msk.bf16.mxu1 %vm844_vm2, %v809_v4  ;;  %1691 = vmatprep.mubr.msk.bf16.mxu0 %vm844_vm2, %v809_v4  ;;  %v1515_v51 = vld [vmem:[%s2121_s6] ss:$0 sm:$0xff] }
 0x109   : > { %v782_v12 = vadd.f32 %v1666_v55, %v717_v10  ;;  %v1602_v13 = vpop.f32.mrb[8].mxu0  ;;  %v803_v15 = vmax.f32 %v779_v9, 0.0 }
 0x10a   : > { %v1603_v14 = vpop.f32.mrb[9].mxu0 }
 0x10b   : > { %v804_v16 = vmax.f32 %v782_v12, 0.0  ;;  %v1604_v17 = vadd.f32 %v1603_v14, %v1602_v13  ;;  %v1605_v18 = vpop.f32.mrb[10].mxu0 }
 0x10c   : > { %v1606_v19 = vpop.f32.mrb[11].mxu0 }
 0x10d   : > { %v810_v21 = vpack.c.bf16 %v804_v16, %v803_v15  ;;  %v1607_v22 = vadd.f32 %v1606_v19, %v1605_v18  ;;  %v722_v23 = vadd.f32 %v1604_v17, %v1979_v47 }
 0x10f   : > { %v787_v25 = vadd.f32 %v786_v7, %v722_v23  ;;  %1678 = vmatmul.mubr.msk.bf16.vlgmr.msra.gmra.mrb[8].mxu1 %vm844_vm2, %v810_v21  ;;  %1692 = vmatmul.mubr.msk.bf16.vlgmr.msra.gmra.mrb[16].mxu0 %vm844_vm2, %v810_v21  ;;  %v725_v26 = vadd.f32 %v1607_v22, %v1979_v47 }
 0x110   : > { %1120 = vmatpush1.bf16.msra.mxu1 %v1770_v20  ;;  %1700 = vmatpush3.bf16.msra.mxu0 %v1776_v44 }
 0x111   : > { %v790_v28 = vadd.f32 %v789_v11, %v725_v26  ;;  %v1608_v29 = vpop.f32.mrb[12].mxu0  ;;  %1121 = vmatprep.subr.bf16.mxu1 %v1775_v24  ;;  %v805_v31 = vmax.f32 %v787_v25, 0.0  ;;  %1701 = vmatprep.subr.bf16.mxu0 %v1777_v45 }
 0x112   : > { %v1609_v30 = vpop.f32.mrb[13].mxu0 }
 0x113   : > { %v806_v32 = vmax.f32 %v790_v28, 0.0  ;;  %v1610_v33 = vadd.f32 %v1609_v30, %v1608_v29  ;;  %v1611_v34 = vpop.f32.mrb[14].mxu0 }
 0x114   : > { %v1612_v35 = vpop.f32.mrb[15].mxu0  ;;  %1122 = vmatpush1.bf16.msra.mxu1 %v1773_v27  ;;  %1702 = vmatpush3.bf16.msra.mxu0 %v1777_v45 }
 0x115   : > { %v811_v36 = vpack.c.bf16 %v806_v32, %v805_v31  ;;  %v730_v37 = vadd.f32 %v1610_v33, %v1979_v47  ;;  %v1613_v38 = vadd.f32 %v1612_v35, %v1611_v34  ;;  %1123 = vmatprep.subr.bf16.mxu1 %v1780_v46  ;;  %1703 = vmatprep.subr.bf16.mxu0 %v1781_v48  ;;  %v1044_v32 = vlaneseq  ;;  %v1042_v35 = vld [vmem:[%s2123_s8] sm:$0x7] }
 0x117   : > { %v795_v39 = vadd.f32 %v1669_v3, %v730_v37  ;;  %v733_v40 = vadd.f32 %v1613_v38, %v1979_v47  ;;  %1681 = vmatprep.mubr.msk.bf16.mxu1 %vm844_vm2, %v811_v36  ;;  %1695 = vmatprep.mubr.msk.bf16.mxu0 %vm844_vm2, %v811_v36  ;;  %v1778_v47 = vld [vmem:[%s2122_s7 + $0x30] ss:$12 sps:$4 sm:$0xff]   ;;  %v1045_v33 = vshrl.u32 %v1044_v32, 7 }
 0x118   : > { %1124 = vmatpush1.bf16.msra.mxu1 %v1778_v47  ;;  %1704 = vmatpush3.bf16.msra.mxu0 %v1781_v48 }
 0x119   : > { %v798_v41 = vadd.f32 %v1670_v8, %v733_v40  ;;  %v807_v42 = vmax.f32 %v795_v39, 0.0  ;;  %v1046_v34 = vsub.s32 0, %v1045_v33  ;;  %v1050_v36 = vsub.s32 1, %v1045_v33 }
 0x11a   : > { %v1054_v37 = vsub.s32 2, %v1045_v33 }
 0x11b   : > { %v808_v43 = vmax.f32 %v798_v41, 0.0  ;;  %v2061_v38 = vrot.slane %v1042_v35, %v1046_v34  ;;  %v2063_v39 = vrot.slane %v1042_v35, %v1050_v36 }
 0x11c   : > { %v1055_v40 = vrot.slane %v1042_v35, %v1054_v37 }
 0x11d   : > { %v812_v44 = vpack.c.bf16 %v808_v43, %v807_v42 }
 0x11f   : > { %1682 = vmatmul.mubr.msk.bf16.gmra.mrb[12].mxu1 %vm844_vm2, %v812_v44  ;;  %1696 = vmatmul.mubr.msk.bf16.gmra.mrb[20].mxu0 %vm844_vm2, %v812_v44 }
 0x120   : > { %1151 = vmatprep.mubr.bf16.mxu1 %v1790_v49 }
 0x1e2   : > { %v1679_v52 = vpop.f32.mrb[8].mxu1  ;;  %v1693_v53 = vpop.f32.mrb[16].mxu0 }
 0x1e3   : > { %v900_v54 = vadd.f32 %v1679_v52, %v1507_v50  ;;  %v996_v55 = vadd.f32 %v1693_v53, %v1515_v51  ;;  %v891_v56 = vpop.f32.mrb[9].mxu1  ;;  %v987_v57 = vpop.f32.mrb[17].mxu0 }
 0x1e4   : > { %v892_v58 = vadd.f32 %v1507_v50, %v891_v56  ;;  %v988_v59 = vadd.f32 %v1515_v51, %v987_v57  ;;  %v1680_v60 = vpop.f32.mrb[10].mxu1  ;;  %v1694_v61 = vpop.f32.mrb[18].mxu0 }
 0x1e5   : > { %1260 = vst.msk [vmem:[%s2029_s14 + $0x10] sm:$0xff] %vm1257_vm3, %v900_v54  ;;  %v903_v62 = vadd.f32 %v1680_v60, %v1507_v50  ;;  %v999_v63 = vadd.f32 %v1694_v61, %v1515_v51  ;;  %v894_v0 = vpop.f32.mrb[11].mxu1  ;;  %v990_v1 = vpop.f32.mrb[19].mxu0  ;;  %v1020_v4 = vmax.f32 %v996_v55, 0.0 }
 0x1e6   : > { %1258 = vst.msk [vmem:[%s2029_s14] sm:$0xff] %vm1257_vm3, %v892_v58  ;;  %v895_v2 = vadd.f32 %v1507_v50, %v894_v0  ;;  %v991_v3 = vadd.f32 %v1515_v51, %v990_v1  ;;  %v1018_v6 = vmax.f32 %v988_v59, 0.0 }
 0x1e7   : > { %1261 = vst.msk [vmem:[%s2029_s14 + $0x18] sm:$0xff] %vm1257_vm3, %v903_v62  ;;  %v1021_v5 = vmax.f32 %v999_v63, 0.0 }
 0x1e8   : > { %1259 = vst.msk [vmem:[%s2029_s14 + $0x8] sm:$0xff] %vm1257_vm3, %v895_v2  ;;  %v1019_v7 = vmax.f32 %v991_v3, 0.0 }
 0x1e9   : > { %v1027_v8 = vpack.c.bf16 %v1021_v5, %v1020_v4 }
 0x1ea   : > { %v1026_v9 = vpack.c.bf16 %v1019_v7, %v1018_v6 }
 0x1ec   : > { %1532 = vmatmul.mubr.msk.bf16.vlgmr.msra.gmra.mrb[16].mxu1 %vm844_vm2, %v1026_v9  ;;  %1705 = vmatprep.mubr.msk.bf16.mxu0 %vm844_vm2, %v1026_v9 }
 0x1ed   : > { %1706 = vmatmul.mubr.msk.bf16.vlgmr.msra.gmra.mrb[24].mxu0 %vm844_vm2, %v1027_v8  ;;  %1161 = vmatprep.mubr.bf16.mxu1 %v1790_v49 }
 0x1f2   : > { %v1683_v10 = vpop.f32.mrb[12].mxu1  ;;  %v1697_v11 = vpop.f32.mrb[20].mxu0 }
 0x1f3   : > { %v916_v12 = vadd.f32 %v1683_v10, %v1507_v50  ;;  %v1012_v13 = vadd.f32 %v1697_v11, %v1515_v51  ;;  %v907_v14 = vpop.f32.mrb[13].mxu1  ;;  %v1003_v15 = vpop.f32.mrb[21].mxu0 }
 0x1f4   : > { %v908_v16 = vadd.f32 %v1507_v50, %v907_v14  ;;  %v1004_v17 = vadd.f32 %v1515_v51, %v1003_v15  ;;  %v1684_v18 = vpop.f32.mrb[14].mxu1  ;;  %v1698_v19 = vpop.f32.mrb[22].mxu0  ;;  %1533 = vmatmul.mubr.msk.bf16.gmra.mrb[20].mxu1 %vm844_vm2, %v1027_v8 }
 0x1f5   : > { %1264 = vst.msk [vmem:[%s2029_s14 + $0x30] sm:$0xff] %vm1257_vm3, %v916_v12  ;;  %v919_v20 = vadd.f32 %v1684_v18, %v1507_v50  ;;  %v1015_v21 = vadd.f32 %v1698_v19, %v1515_v51  ;;  %v910_v22 = vpop.f32.mrb[15].mxu1  ;;  %v1006_v23 = vpop.f32.mrb[23].mxu0  ;;  %1171 = vmatprep.mubr.bf16.mxu1 %v1790_v49  ;;  %v1024_v26 = vmax.f32 %v1012_v13, 0.0 }
 0x1f6   : > { %1262 = vst.msk [vmem:[%s2029_s14 + $0x20] sm:$0xff] %vm1257_vm3, %v908_v16  ;;  %v911_v24 = vadd.f32 %v1507_v50, %v910_v22  ;;  %v1007_v25 = vadd.f32 %v1515_v51, %v1006_v23  ;;  %v1022_v28 = vmax.f32 %v1004_v17, 0.0 }
 0x1f7   : > { %1265 = vst.msk [vmem:[%s2029_s14 + $0x38] sm:$0xff] %vm1257_vm3, %v919_v20  ;;  %v1025_v27 = vmax.f32 %v1015_v21, 0.0 }
 0x1f8   : > { %1263 = vst.msk [vmem:[%s2029_s14 + $0x28] sm:$0xff] %vm1257_vm3, %v911_v24  ;;  %v1023_v29 = vmax.f32 %v1007_v25, 0.0 }
 0x1f9   : > { %v1029_v30 = vpack.c.bf16 %v1025_v27, %v1024_v26 }
 0x1fa   : > { %v1028_v31 = vpack.c.bf16 %v1023_v29, %v1022_v28 }
 0x1fc   : > { %1534 = vmatmul.mubr.msk.bf16.gmra.mrb[24].mxu1 %vm844_vm2, %v1028_v31  ;;  %1709 = vmatprep.mubr.msk.bf16.mxu0 %vm844_vm2, %v1028_v31 }
 0x1fd   : > { %1710 = vmatmul.mubr.msk.bf16.gmra.mrb[28].mxu0 %vm844_vm2, %v1029_v30  ;;  %1181 = vmatprep.mubr.bf16.mxu1 %v1790_v49 }
 0x204   : > { %1535 = vmatmul.mubr.msk.bf16.gmra.mrb[28].mxu1 %vm844_vm2, %v1029_v30 }
 0x2bf   : > { %v1153_v41 = vpop.f32.mrb[16].mxu1 }
 0x2c0   : > { %v1154_v42 = vadd.f32 %v1153_v41, %v2061_v38  ;;  %v1155_v43 = vpop.f32.mrb[17].mxu1  ;;  %v1707_v44 = vpop.f32.mrb[24].mxu0 }
 0x2c1   : > { %v1156_v45 = vadd.f32 %v1155_v43, %v2063_v39  ;;  %v1235_v46 = vadd.f32 %v1707_v44, %v1055_v40  ;;  %v1157_v47 = vpop.f32.mrb[18].mxu1  ;;  %v1226_v48 = vpop.f32.mrb[25].mxu0 }
 0x2c2   : > { %v1158_v49 = vadd.f32 %v1157_v47, %v2061_v38  ;;  %v1227_v50 = vadd.f32 %v1226_v48, %v1055_v40  ;;  %v1159_v51 = vpop.f32.mrb[19].mxu1  ;;  %v1708_v52 = vpop.f32.mrb[26].mxu0 }
 0x2c3   : > { %v1558_v53 = vpack.c.bf16 %v1156_v45, %v1154_v42  ;;  %v1563_v54 = vpack.c.bf16 %v1235_v46, %v1235_v46  ;;  %v1160_v55 = vadd.f32 %v1159_v51, %v2063_v39  ;;  %v1238_v56 = vadd.f32 %v1708_v52, %v1055_v40  ;;  %v1229_v57 = vpop.f32.mrb[27].mxu0 }
 0x2c4   : > { %v1559_v58 = vpack.c.bf16 %v1227_v50, %v1227_v50  ;;  %v1230_v59 = vadd.f32 %v1229_v57, %v1055_v40 }
 0x2c5   : > { %1346 = vst [vmem:[%s2072_s24] sm:$0xff] %v1558_v53  ;;  %1352 = vst.msk [vmem:[%s2072_s24 + $0x20] sm:$0xf] %vm1347_vm4, %v1563_v54  ;;  %v1560_v60 = vpack.c.bf16 %v1160_v55, %v1158_v49  ;;  %v1565_v61 = vpack.c.bf16 %v1238_v56, %v1238_v56 }
 0x2c6   : > { %1348 = vst.msk [vmem:[%s2072_s24 + $0x8] sm:$0xf] %vm1347_vm4, %v1559_v58  ;;  %v1561_v62 = vpack.c.bf16 %v1230_v59, %v1230_v59 }
 0x2c7   : > { %1349 = vst [vmem:[%s2072_s24 + $0xc] sm:$0xff] %v1560_v60  ;;  %1354 = vst.msk [vmem:[%s2072_s24 + $0x2c] sm:$0xf] %vm1347_vm4, %v1565_v61  ;;  %v1163_v63 = vpop.f32.mrb[20].mxu1 }
 0x2c8   : > { %1350 = vst.msk [vmem:[%s2072_s24 + $0x14] sm:$0xf] %vm1347_vm4, %v1561_v62  ;;  %v1164_v0 = vadd.f32 %v1163_v63, %v2061_v38  ;;  %v1165_v1 = vpop.f32.mrb[21].mxu1 }
 0x2c9   : > { %v1166_v2 = vadd.f32 %v1165_v1, %v2063_v39  ;;  %v1167_v3 = vpop.f32.mrb[22].mxu1 }
 0x2ca   : > { %v1168_v4 = vadd.f32 %v1167_v3, %v2061_v38  ;;  %v1169_v5 = vpop.f32.mrb[23].mxu1 }
 0x2cb   : > { %v1562_v6 = vpack.c.bf16 %v1166_v2, %v1164_v0  ;;  %v1170_v7 = vadd.f32 %v1169_v5, %v2063_v39 }
 0x2cd   : > { %1351 = vst [vmem:[%s2072_s24 + $0x18] sm:$0xff] %v1562_v6  ;;  %v1564_v8 = vpack.c.bf16 %v1170_v7, %v1168_v4 }
 0x2cf   : > { %1353 = vst [vmem:[%s2072_s24 + $0x24] sm:$0xff] %v1564_v8  ;;  %v1173_v9 = vpop.f32.mrb[24].mxu1 }
 0x2d0   : > { %v1174_v10 = vadd.f32 %v1173_v9, %v2061_v38  ;;  %v1175_v11 = vpop.f32.mrb[25].mxu1  ;;  %v1711_v12 = vpop.f32.mrb[28].mxu0 }
 0x2d1   : > { %v1176_v13 = vadd.f32 %v1175_v11, %v2063_v39  ;;  %v1251_v14 = vadd.f32 %v1711_v12, %v1055_v40  ;;  %v1177_v15 = vpop.f32.mrb[26].mxu1  ;;  %v1242_v16 = vpop.f32.mrb[29].mxu0 }
 0x2d2   : > { %v1178_v17 = vadd.f32 %v1177_v15, %v2061_v38  ;;  %v1243_v18 = vadd.f32 %v1242_v16, %v1055_v40  ;;  %v1179_v19 = vpop.f32.mrb[27].mxu1  ;;  %v1712_v20 = vpop.f32.mrb[30].mxu0 }
 0x2d3   : > { %v1566_v21 = vpack.c.bf16 %v1176_v13, %v1174_v10  ;;  %v1571_v22 = vpack.c.bf16 %v1251_v14, %v1251_v14  ;;  %v1180_v23 = vadd.f32 %v1179_v19, %v2063_v39  ;;  %v1254_v24 = vadd.f32 %v1712_v20, %v1055_v40  ;;  %v1245_v25 = vpop.f32.mrb[31].mxu0 }
 0x2d4   : > { %v1567_v26 = vpack.c.bf16 %v1243_v18, %v1243_v18  ;;  %v1246_v27 = vadd.f32 %v1245_v25, %v1055_v40 }
 0x2d5   : > { %1355 = vst [vmem:[%s2072_s24 + $0x30] sm:$0xff] %v1566_v21  ;;  %1360 = vst.msk [vmem:[%s2072_s24 + $0x50] sm:$0xf] %vm1347_vm4, %v1571_v22  ;;  %v1568_v28 = vpack.c.bf16 %v1180_v23, %v1178_v17  ;;  %v1573_v29 = vpack.c.bf16 %v1254_v24, %v1254_v24 }
 0x2d6   : > { %1356 = vst.msk [vmem:[%s2072_s24 + $0x38] sm:$0xf] %vm1347_vm4, %v1567_v26  ;;  %v1569_v30 = vpack.c.bf16 %v1246_v27, %v1246_v27 }
 0x2d7   : > { %1357 = vst [vmem:[%s2072_s24 + $0x3c] sm:$0xff] %v1568_v28  ;;  %1362 = vst.msk [vmem:[%s2072_s24 + $0x5c] sm:$0xf] %vm1347_vm4, %v1573_v29  ;;  %v1183_v31 = vpop.f32.mrb[28].mxu1 }
 0x2d8   : > { %1358 = vst.msk [vmem:[%s2072_s24 + $0x44] sm:$0xf] %vm1347_vm4, %v1569_v30  ;;  %v1184_v32 = vadd.f32 %v1183_v31, %v2061_v38  ;;  %v1185_v33 = vpop.f32.mrb[29].mxu1 }
 0x2d9   : > { %v1186_v34 = vadd.f32 %v1185_v33, %v2063_v39  ;;  %v1187_v35 = vpop.f32.mrb[30].mxu1 }
 0x2da   : > { %v1188_v36 = vadd.f32 %v1187_v35, %v2061_v38  ;;  %v1189_v37 = vpop.f32.mrb[31].mxu1 }
 0x2db   : > { %v1570_v40 = vpack.c.bf16 %v1186_v34, %v1184_v32  ;;  %v1190_v41 = vadd.f32 %v1189_v37, %v2063_v39 }
 0x2dd   : > { %1359 = vst [vmem:[%s2072_s24 + $0x48] sm:$0xff] %v1570_v40  ;;  %v1572_v42 = vpack.c.bf16 %v1190_v41, %v1188_v36 }
 0x2df   : > { %1361 = vst [vmem:[%s2072_s24 + $0x54] sm:$0xff] %v1572_v42 }
 0x2e0 PF: > { %s21_s13 = sadd.s32 1, %s1788_s13  }
 0x2e1   : > { %p18_p4 = scmp.ge.s32.totalorder %s21_s13, 6  }
 0x2e3   :  { %20 = sbr.rel (!%p18_p4) target bundleno = 1 (0x1), region = 98 }

</bundles_post_ra>
